<compile_context>
chip_gen: v6e
topology: v6e:2x2x1
jax: 0.10.0
libtpu: 0.0.40
codegen_flags: <defaults>
</compile_context>

<pallas_src>
import jax
import jax.numpy as jnp
from jax import lax
from jax.experimental import pallas as pl
from jax.experimental.pallas import tpu as pltpu


def _round_up(x, m):
    return ((x + m - 1) // m) * m


def _embedding_onehot_kernel(idx_ref, w_ref, b_ref, o_ref, acc_ref):
    # idx_ref : (TN, 1)  int32   token ids for this token tile
    # w_ref   : (TV, E)  f32     one vocab tile of the (V, E) table (= W.T)
    # b_ref   : (1, E)   f32     bias (VMEM resident, same block every step)
    # o_ref   : (TN, E)  f32     output tile (resident across the vocab axis)
    # acc_ref : (TN, E)  f32     VMEM accumulator scratch
    j = pl.program_id(1)

    @pl.when(j == 0)
    def _():
        acc_ref[...] = jnp.zeros_like(acc_ref)

    ids = idx_ref[...]                                   # (TN, 1) int32
    tn = ids.shape[0]
    tv = w_ref.shape[0]
    # Column ids covered by this vocab tile.
    col = lax.broadcasted_iota(jnp.int32, (tn, tv), 1) + j * tv
    onehot = (ids == col).astype(w_ref.dtype)            # (TN, TV) one-hot slice
    # "Gather" as an MXU matmul, accumulated in f32.
    acc_ref[...] += jnp.dot(onehot, w_ref[...], preferred_element_type=jnp.float32)

    @pl.when(j == pl.num_programs(1) - 1)
    def _():
        o_ref[...] = (acc_ref[...] + b_ref[...]).astype(o_ref.dtype)


def prepare_embedding_table(weight):
    """One-time parameter prep (outside the hot path).

    PyTorch Linear stores weight as (E, V); the kernel wants the row-major
    (V, E) table so each vocab tile is a contiguous (TV, E) block.
    """
    return jnp.asarray(weight).T


def my_embedding(x, table, bias, *, tn=128, tv=512):
    """x: int array of any shape; table: (V, E) = W.T; bias: (E,).

    Returns (*x.shape, E), matching MyEmbedding.forward.
    """
    vocab_size, emb_size = table.shape

    # --- token axis ---
    idx = x.reshape(-1).astype(jnp.int32)
    n = idx.shape[0]
    tn = int(min(tn, _round_up(max(n, 1), 8)))            # keep tile >= 8, <= 128
    n_pad = _round_up(n, tn)
    idx2 = jnp.pad(idx, (0, n_pad - n)).reshape(n_pad, 1)  # padded rows sliced off

    # --- vocab (reduction) axis ---
    if vocab_size <= tv:
        tv = _round_up(vocab_size, 8)                      # single vocab tile
    v_pad = _round_up(vocab_size, tv)
    table_p = table
    if v_pad != vocab_size:
        table_p = jnp.pad(table, ((0, v_pad - vocab_size), (0, 0)))

    b2 = bias.reshape(1, emb_size).astype(jnp.float32)

    grid = (n_pad // tn, v_pad // tv)
    out = pl.pallas_call(
        _embedding_onehot_kernel,
        out_shape=jax.ShapeDtypeStruct((n_pad, emb_size), table.dtype),
        grid_spec=pltpu.PrefetchScalarGridSpec(
            num_scalar_prefetch=0,
            grid=grid,
            in_specs=[
                # Token ids: one (TN, 1) tile per token step, reused over vocab.
                pl.BlockSpec((tn, 1), lambda i, j: (i, 0)),
                # Embedding table: stream vocab tiles (double-buffered by Pallas).
                pl.BlockSpec((tv, emb_size), lambda i, j: (j, 0)),
                # Bias: tiny, VMEM resident.
                pl.BlockSpec((1, emb_size), lambda i, j: (0, 0)),
            ],
            # Same output block across the vocab axis -> resident accumulator.
            out_specs=pl.BlockSpec((tn, emb_size), lambda i, j: (i, 0)),
            scratch_shapes=[pltpu.VMEM((tn, emb_size), jnp.float32)],
        ),
        compiler_params=pltpu.CompilerParams(
            # Token tiles independent -> megacore sharding; vocab is a reduction.
            dimension_semantics=("parallel", "arbitrary"),
        ),
    )(idx2, table_p, b2)

    return out[:n].reshape(*x.shape, emb_size)


if __name__ == "__main__":
    key = jax.random.PRNGKey(0)
    k_w, k_b, k_x = jax.random.split(key, 3)

    batch, seq = 2, 8
    vocab_size, embedding_size = 32, 32

    # Deterministic Linear(vocab_size, embedding_size) init (PyTorch-style uniform).
    bound = 1.0 / (vocab_size ** 0.5)
    weight = jax.random.uniform(
        k_w, (embedding_size, vocab_size), jnp.float32, -bound, bound)
    bias = jax.random.uniform(
        k_b, (embedding_size,), jnp.float32, -bound, bound)

    x = jax.random.randint(k_x, (batch, seq), 0, vocab_size, dtype=jnp.int32)

    # One-time prep: (E, V) Linear weight -> contiguous (V, E) table.
    table = prepare_embedding_table(weight)

    y = my_embedding(x, table, bias)
    jax.block_until_ready(y)

    # Reference check against plain-JAX one-hot @ W.T + b (the PyTorch forward).
    one_hot = jax.nn.one_hot(x.reshape(-1), vocab_size, dtype=jnp.float32)
    y_ref = (one_hot @ weight.T + bias).reshape(batch, seq, embedding_size)
    assert y.shape == (batch, seq, embedding_size)
    assert jnp.allclose(y, y_ref, atol=1e-5), "mismatch vs reference"

    print("KERNEL_OK")
</pallas_src>

<mosaic_0001>
module attributes {stable_mosaic.version = 11 : i64} {
  func.func @_embedding_onehot_kernel(%arg0: i32, %arg1: i32, %arg2: memref<16x1xi32, #tpu.memory_space<vmem>>, %arg3: memref<32x32xf32, #tpu.memory_space<vmem>>, %arg4: memref<1x32xf32, #tpu.memory_space<vmem>>, %arg5: memref<16x32xf32, #tpu.memory_space<vmem>>, %arg6: memref<16x32xf32, #tpu.memory_space<vmem>>) attributes {dimension_semantics = [#tpu.dimension_semantics<parallel>, #tpu.dimension_semantics<arbitrary>], iteration_bounds = array<i64: 1, 1>, scalar_prefetch = 0 : i64, scratch_operands = 1 : i64, tpu.core_type = #tpu.core_type<tc>, window_params = [{transform_indices = @transform_0, window_bounds = array<i64: 16, 1>}, {transform_indices = @transform_1, window_bounds = array<i64: 32, 32>}, {pipeline_mode = #tpu.pipeline_mode<synchronous>, transform_indices = @transform_2, window_bounds = array<i64: 1, 32>}, {transform_indices = @transform_3, window_bounds = array<i64: 16, 32>}]} {
    %c0_i32 = arith.constant 0 : i32
    %0 = arith.cmpi eq, %arg1, %c0_i32 : i32
    %1 = arith.extui %0 : i1 to i32
    %c0_i32_0 = arith.constant 0 : i32
    %2 = arith.cmpi ne, %1, %c0_i32_0 : i32
    scf.if %2 {
      %cst_10 = arith.constant 0.000000e+00 : f32
      %20 = vector.broadcast %cst_10 : f32 to vector<16x32xf32>
      %c0_11 = arith.constant 0 : index
      %c0_12 = arith.constant 0 : index
      %21 = vector.load %arg6[%c0_11, %c0_12] : memref<16x32xf32, #tpu.memory_space<vmem>>, vector<16x32xf32>
      tpu.vector_store %arg6[%c0_11, %c0_12], %20 {strides = array<i32>} : memref<16x32xf32, #tpu.memory_space<vmem>>, vector<16x32xf32>,
    } else {
    }
    %c0 = arith.constant 0 : index
    %c0_1 = arith.constant 0 : index
    %3 = vector.load %arg2[%c0, %c0_1] : memref<16x1xi32, #tpu.memory_space<vmem>>, vector<16x1xi32>
    %4 = tpu.iota {dimensions = array<i32: 1>} : vector<16x32xi32>
    %c32_i32 = arith.constant 32 : i32
    %5 = arith.muli %arg1, %c32_i32 : i32
    %6 = vector.broadcast %5 : i32 to vector<16x32xi32>
    %7 = arith.addi %4, %6 : vector<16x32xi32>
    %8 = vector.broadcast %3 : vector<16x1xi32> to vector<16x32xi32>
    %9 = arith.cmpi eq, %8, %7 : vector<16x32xi32>
    %10 = arith.extui %9 : vector<16x32xi1> to vector<16x32xi32>
    %11 = arith.sitofp %10 : vector<16x32xi32> to vector<16x32xf32>
    %c0_2 = arith.constant 0 : index
    %c0_3 = arith.constant 0 : index
    %12 = vector.load %arg6[%c0_2, %c0_3] : memref<16x32xf32, #tpu.memory_space<vmem>>, vector<16x32xf32>
    %c0_4 = arith.constant 0 : index
    %c0_5 = arith.constant 0 : index
    %13 = vector.load %arg3[%c0_4, %c0_5] : memref<32x32xf32, #tpu.memory_space<vmem>>, vector<32x32xf32>
    %cst = arith.constant dense<0.000000e+00> : vector<16x32xf32>
    %14 = tpu.matmul %11, %13, %cst {dimension_numbers = #tpu.dot_dimension_numbers<[1], [0], [0], [1], [0, 0, 1, 1], [], []>} : vector<16x32xf32>, vector<32x32xf32>, vector<16x32xf32> -> vector<16x32xf32>
    %15 = arith.addf %12, %14 : vector<16x32xf32>
    %c0_6 = arith.constant 0 : index
    %c0_7 = arith.constant 0 : index
    %16 = vector.load %arg6[%c0_6, %c0_7] : memref<16x32xf32, #tpu.memory_space<vmem>>, vector<16x32xf32>
    tpu.vector_store %arg6[%c0_6, %c0_7], %15 {strides = array<i32>} : memref<16x32xf32, #tpu.memory_space<vmem>>, vector<16x32xf32>,
    %c0_i32_8 = arith.constant 0 : i32
    %17 = arith.cmpi eq, %arg1, %c0_i32_8 : i32
    %18 = arith.extui %17 : i1 to i32
    %c0_i32_9 = arith.constant 0 : i32
    %19 = arith.cmpi ne, %18, %c0_i32_9 : i32
    scf.if %19 {
      %c0_10 = arith.constant 0 : index
      %c0_11 = arith.constant 0 : index
      %20 = vector.load %arg6[%c0_10, %c0_11] : memref<16x32xf32, #tpu.memory_space<vmem>>, vector<16x32xf32>
      %c0_12 = arith.constant 0 : index
      %c0_13 = arith.constant 0 : index
      %21 = vector.load %arg4[%c0_12, %c0_13] : memref<1x32xf32, #tpu.memory_space<vmem>>, vector<1x32xf32>
      %22 = vector.broadcast %21 : vector<1x32xf32> to vector<16x32xf32>
      %23 = arith.addf %20, %22 : vector<16x32xf32>
      %c0_14 = arith.constant 0 : index
      %c0_15 = arith.constant 0 : index
      %24 = vector.load %arg5[%c0_14, %c0_15] : memref<16x32xf32, #tpu.memory_space<vmem>>, vector<16x32xf32>
      tpu.vector_store %arg5[%c0_14, %c0_15], %23 {strides = array<i32>} : memref<16x32xf32, #tpu.memory_space<vmem>>, vector<16x32xf32>,
    } else {
    }
    return
  }
  func.func @transform_0(%arg0: i32, %arg1: i32) -> (i32, i32) {
    %c0_i32 = arith.constant 0 : i32
    %c0_i32_0 = arith.constant 0 : i32
    return %arg0, %c0_i32 : i32, i32
  }
  func.func @transform_1(%arg0: i32, %arg1: i32) -> (i32, i32) {
    %c0_i32 = arith.constant 0 : i32
    %c0_i32_0 = arith.constant 0 : i32
    return %arg1, %c0_i32 : i32, i32
  }
  func.func @transform_2(%arg0: i32, %arg1: i32) -> (i32, i32) {
    %c0_i32 = arith.constant 0 : i32
    %c0_i32_0 = arith.constant 0 : i32
    %c0_i32_1 = arith.constant 0 : i32
    return %c0_i32, %c0_i32_0 : i32, i32
  }
  func.func @transform_3(%arg0: i32, %arg1: i32) -> (i32, i32) {
    %c0_i32 = arith.constant 0 : i32
    %c0_i32_0 = arith.constant 0 : i32
    return %arg0, %c0_i32 : i32, i32
  }
}

</mosaic_0001>

<bundles_post_ra>
// kernel: tpu_custom_call.1
= control target key start
LH: loop header
LB: loop body
LE: loop exit
PB: predicated region body
PF: predicated region fallthrough
CT: control target
= control target key end

     0   :  { %8 = vsyncpa [#allocation4], 0  ;;  %s308_s0 = inlined_call_operand.vmem [shape: s32[16,1], index: 0, kind: input, shape index: {}]   ;;  %s309_s1 = inlined_call_operand.hbm [shape: f32[32,32], index: 1, kind: input, shape index: {}]   ;;  %s310_s2 = inlined_call_operand.vmem [shape: f32[1,32], index: 2, kind: input, shape index: {}]   ;;  %s311_s3 = inlined_call_operand.hbm [shape: f32[16,32], index: 3, kind: output, shape index: {}]  }
   0x1   :  { %9 = vsyncpa [#allocation5], 0  ;;  %s253_s12 = smov [#allocation3]  }
   0x2   :  { %s17_s13 = sshll.u32 %s253_s12, 4  ;;  %s18_s13 = int_to_ptr.vmem [resolvable:$true] %s17_s13 }
   0x3   :  { %s217_s14 = scalar_lea.vmem %s18_s13, 512  ;;  %p222_p1 = scmp.lt.s32.totalorder %s18_s13, %s18_s13 }
   0x4   :  { %p218_p0 = scmp.ne.s32.totalorder %s18_s13, %s217_s14  ;;  %p223_p2 = scmp.lt.s32.totalorder %s217_s14, %s217_s14 }
   0x6   :  { %p224_p3 = por %p223_p2, %p222_p1 }
   0x8   :  { %p225_p4 = pnand %p224_p3, %p218_p0 }
   0xa   :  { %228 = shalt.err (!%p225_p4)
}
   0xb   :  { %s254_s15 = smov 128   ;;  %s255_s16 = smov 8  }
   0xc   :  { %23 = dma.hbm_to_vmem [thread:$0]  %s309_s1, 512, %s18_s13, [#allocation4], %s254_s15, %s254_s15, %s255_s16  }
   0xd   :  { %249 = dma.done.wait [#allocation4], 512  }
   0xe   :  { %250 = vsyncadd [#allocation4], 4294966784  ;;  %v256_v0 = vmov 0   ;;  %vm33_vm0 = vcmask 261120   ;;  %v257_v1 = vmov 0.0   ;;  %v36_v2 = vld [vmem:[%s308_s0] sm:$0xff]  ;;  %v38_v8 = vlaneseq }
   0xf   :  { %208 = vset.pattern.permute.xlu0 %v256_v0  ;;  %34 = vst.msk [vmem:[#allocation2] sm:$0xff] %vm33_vm0, %v257_v1  ;;  %35 = vst.msk [vmem:[#allocation2 + $0x8] sm:$0xff] %vm33_vm0, %v257_v1  ;;  %v60_v3 = vld [vmem:[#allocation3 + $0x18] sm:$0xff]  ;;  %v59_v4 = vld [vmem:[#allocation3 + $0x10] sm:$0xff]  ;;  %s258_s23 = smov [#allocation6]  }
  0x10   :  { %44 = vperm.xlu0 %208, %v36_v2   ;;  %191 = vmatprep.subr.mxu0 %v60_v3  ;;  %v37_v5 = vld [vmem:[%s308_s0 + $0x8] sm:$0xff]  ;;  %v58_v6 = vld [vmem:[#allocation3 + $0x8] sm:$0xff]  ;;  %v57_v7 = vld [vmem:[#allocation3] sm:$0xff]  ;;  %v39_v9 = vand.u32 127, %v38_v8  ;;  %s168_s24 = sshll.u32 %s258_s23, 4  ;;  %s169_s24 = int_to_ptr.vmem [resolvable:$true] %s168_s24 }
  0x11   :  { %192 = vmatpush3.msra.mxu0 %v60_v3  ;;  %v184_v20 = vld [vmem:[%s310_s2] ss:$0 sm:$0xff]  ;;  %s229_s25 = scalar_lea.vmem %s169_s24, 256  ;;  %p234_p6 = scmp.lt.s32.totalorder %s169_s24, %s169_s24 }
  0x12   :  { %193 = vmatprep.subr.mxu0 %v59_v4  ;;  %p230_p5 = scmp.ne.s32.totalorder %s169_s24, %s229_s25  ;;  %p235_p7 = scmp.lt.s32.totalorder %s229_s25, %s229_s25 }
  0x13   :  { %194 = vmatpush3.msra.mxu0 %v59_v4 }
  0x14   :  { %47 = vperm.xlu0 %208, %v37_v5   ;;  %195 = vmatprep.subr.mxu0 %v58_v6  ;;  %p236_p8 = por %p235_p7, %p234_p6 }
  0x15   :  { %196 = vmatpush3.msra.mxu0 %v58_v6 }
  0x16   :  { %197 = vmatprep.subr.mxu0 %v57_v7  ;;  %v56_v14 = vld [vmem:[#allocation2 + $0x8] sm:$0xff]  ;;  %v55_v16 = vld [vmem:[#allocation2] sm:$0xff]  ;;  %p237_p9 = pnand %p236_p8, %p230_p5 }
  0x17   :  { %198 = vmatpush3.msra.mxu0 %v57_v7 }
  0x8b   :  { %v45_v10 = vpop.permute.xlu0 %44 }
  0x8c   :  { %vm49_vm1 = vcmp.eq.s32.totalorder %v45_v10, %v39_v9 }
  0x8d   :  { %v180_v11 = vsel %vm49_vm1, 1.0, %v257_v1 }
  0x8e   :  { %199 = vmatprep.mubr.msk.f32.mxu0 %vm33_vm0, %v180_v11 }
  0x8f   :  { %v48_v12 = vpop.permute.xlu0 %47 }
  0x90   :  { %vm50_vm2 = vcmp.eq.s32.totalorder %v48_v12, %v39_v9 }
  0x91   :  { %v181_v13 = vsel %vm50_vm2, 1.0, %v257_v1 }
  0x92   :  { %200 = vmatmul.mubr.msk.f32.vlgmr.msra.gmra.mxu0 %vm33_vm0, %v181_v13 }
 0x152   :  { %v201_v15 = vpop.f32.mrf.mxu0 }
 0x153   :  { %v144_v17 = vadd.f32 %v201_v15, %v56_v14 }
 0x154   :  { %v134_v18 = vpop.f32.mrf.mxu0 }
 0x155   :  { %146 = vst.msk [vmem:[#allocation2 + $0x8] sm:$0xff] %vm33_vm0, %v144_v17  ;;  %v143_v19 = vadd.f32 %v134_v18, %v55_v16 }
 0x157   :  { %145 = vst.msk [vmem:[#allocation2] sm:$0xff] %vm33_vm0, %v143_v19 }
 0x15c   :  { %v151_v21 = vld [vmem:[#allocation2 + $0x8] sm:$0xff] }
 0x15d   :  { %v160_v22 = vadd.f32 %v184_v20, %v151_v21 }
 0x15e   :  { %v150_v23 = vld [vmem:[#allocation2] sm:$0xff] }
 0x15f   :  { %v159_v24 = vadd.f32 %v184_v20, %v150_v23  ;;  %162 = vst.msk [vmem:[#allocation6 + $0x8] sm:$0xff] %vm33_vm0, %v160_v22 }
 0x161   :  { %161 = vst.msk [vmem:[#allocation6] sm:$0xff] %vm33_vm0, %v159_v24 }
 0x162   :  { %240 = shalt.err (!%p237_p9)
}
 0x163   :  { %174 = dma.vmem_to_hbm [thread:$0]  %s169_s24, 256, %s311_s3, [#allocation5], %s254_s15, %s254_s15, %s255_s16  }
 0x164   :  { %251 = dma.done.wait [#allocation5], 256  }
 0x165   :  { %252 = vsyncadd [#allocation5], 4294967040 }
 0x166   :  { %178 = vsyncpa [#allocation4], 1 }
 0x167   :  { %179 = vsyncpa [#allocation5], 1 }

</bundles_post_ra>
